<compile_context>
chip_gen: v6e
topology: v6e:2x2x1
jax: 0.10.0
libtpu: 0.0.40
codegen_flags: <defaults>
</compile_context>

<pallas_src>
import functools

import jax
import jax.numpy as jnp
from jax.experimental import pallas as pl
from jax.experimental.pallas import tpu as pltpu


_LANE = 128
_MIB = 1024 * 1024


# --------------------------------------------------------------------------- #
# Kernels
# --------------------------------------------------------------------------- #
def _se_fused_kernel(x_ref, w1t_ref, b1_ref, w2t_ref, b2_ref, o_ref, *, inv_hw):
    """Single fused pass: pool -> fc1 -> relu -> fc2 -> sigmoid -> scale."""
    x = x_ref[...].astype(jnp.float32)                         # (TB, C, HW)

    # Global average pool (AdaptiveAvgPool2d(1)): sum over lanes / (H*W).
    pooled = jnp.sum(x, axis=-1) * inv_hw                      # (TB, C)

    # fc1 (1x1 conv == matmul) + ReLU.
    h = jnp.dot(pooled, w1t_ref[...],
                preferred_element_type=jnp.float32) + b1_ref[...]   # (TB, Cr)
    h = jnp.maximum(h, 0.0)

    # fc2 (1x1 conv == matmul) + Sigmoid.
    s = jnp.dot(h, w2t_ref[...],
                preferred_element_type=jnp.float32) + b2_ref[...]   # (TB, C)
    s = jax.nn.sigmoid(s)

    # Channel-wise scale of the input.
    o_ref[...] = (x * s[:, :, None]).astype(o_ref.dtype)


def _se_pool_kernel(x_ref, w1_ref, b1_ref, w2_ref, b2_ref, s_ref, acc_ref,
                    *, hw, thw, inv_hw):
    """Fallback pass 1: accumulate the pooled sum over H*W tiles, then compute
    the per-channel sigmoid scale s on the last H*W step (column-oriented so C
    stays on sublanes end-to-end)."""
    j = pl.program_id(1)

    @pl.when(j == 0)
    def _():
        acc_ref[...] = jnp.zeros_like(acc_ref)

    x = x_ref[...].astype(jnp.float32)                          # (C, THW)
    # Mask the ragged H*W tail (out-of-bounds lanes are NOT guaranteed zero).
    lane = jax.lax.broadcasted_iota(jnp.int32, x.shape, 1) + j * thw
    x = jnp.where(lane < hw, x, 0.0)
    acc_ref[...] += jnp.sum(x, axis=-1, keepdims=True)          # (C, 1)

    @pl.when(j == pl.num_programs(1) - 1)
    def _():
        pooled = acc_ref[...] * inv_hw                          # (C, 1)
        h = jnp.dot(w1_ref[...], pooled,
                    preferred_element_type=jnp.float32) + b1_ref[...]   # (Cr, 1)
        h = jnp.maximum(h, 0.0)
        s = jnp.dot(w2_ref[...], h,
                    preferred_element_type=jnp.float32) + b2_ref[...]   # (C, 1)
        s_ref[...] = jax.nn.sigmoid(s)


def _se_scale_kernel(x_ref, s_ref, o_ref):
    """Fallback pass 2: o = x * s (s broadcast over the H*W lanes)."""
    x = x_ref[...].astype(jnp.float32)        # (C, THW)
    s = s_ref[...].astype(jnp.float32)        # (C, 1)
    o_ref[...] = (x * s).astype(o_ref.dtype)


# --------------------------------------------------------------------------- #
# Tiling plan
# --------------------------------------------------------------------------- #
def _round_up(x, m):
    return ((x + m - 1) // m) * m


def _vmem_capacity_bytes():
    """Generation-aware VMEM size; conservative fallback if the query fails."""
    try:
        info = pltpu.get_tpu_info()
        cap = getattr(info, "vmem_capacity_bytes", None)
        if cap:
            return int(cap)
    except Exception:
        pass
    return 64 * _MIB  # v7x per-TensorCore size: safe everywhere.


def _plan(n, c, hw, itemsize, vmem_cap, max_tile_bytes=None):
    """Pick the execution mode and tile sizes.

    Returns ("fused", tb, None) or ("split", 1, thw)."""
    sub = max(8, 32 // max(1, itemsize))          # sublane packing (f32:8, bf16:16)
    c_pad = _round_up(c, sub)
    hw_pad = _round_up(hw, _LANE)

    # Per-tile budget: working set ~= 2*in + 2*out tiles (double buffering)
    # plus ~2 tiles of temporaries; keep ~25% VMEM headroom.
    tile_budget = max(_MIB // 4, int(vmem_cap * 0.75) // 6)
    if max_tile_bytes is not None:
        tile_budget = min(tile_budget, max_tile_bytes)

    per_sample = c_pad * hw_pad * itemsize

    if per_sample <= tile_budget:
        tb = max(1, min(n, tile_budget // per_sample))
        # v7x-like parts (<= 64 MiB VMEM per TensorCore, 2 TCs): keep an even
        # number of grid steps >= 2 so the "parallel" batch axis balances.
        if vmem_cap <= 64 * _MIB and n >= 2:
            steps = max(2, pl.cdiv(n, tb))
            if steps % 2:
                steps += 1
            tb = pl.cdiv(n, steps)
        return "fused", tb, None

    # Per-sample feature map exceeds the tile budget: split H*W instead.
    thw = max(_LANE, (tile_budget // max(1, c_pad * itemsize)) // _LANE * _LANE)
    if thw >= hw:
        return "fused", 1, None
    return "split", 1, thw


# --------------------------------------------------------------------------- #
# pallas_call wrappers
# --------------------------------------------------------------------------- #
def _se_fused(x, w1t, b1r, w2t, b2r, tb, vmem_limit):
    n, c, hw = x.shape
    cr = w1t.shape[1]
    kernel = functools.partial(_se_fused_kernel, inv_hw=1.0 / hw)
    return pl.pallas_call(
        kernel,
        out_shape=jax.ShapeDtypeStruct((n, c, hw), x.dtype),
        grid_spec=pltpu.PrefetchScalarGridSpec(
            num_scalar_prefetch=0,
            grid=(pl.cdiv(n, tb),),
            in_specs=[
                pl.BlockSpec((tb, c, hw), lambda i: (i, 0, 0)),  # x tile
                pl.BlockSpec((c, cr), lambda i: (0, 0)),         # fc1 weight^T
                pl.BlockSpec((1, cr), lambda i: (0, 0)),         # fc1 bias row
                pl.BlockSpec((cr, c), lambda i: (0, 0)),         # fc2 weight^T
                pl.BlockSpec((1, c), lambda i: (0, 0)),          # fc2 bias row
            ],
            out_specs=pl.BlockSpec((tb, c, hw), lambda i: (i, 0, 0)),
        ),
        compiler_params=pltpu.CompilerParams(
            dimension_semantics=("parallel",),
            vmem_limit_bytes=vmem_limit,
        ),
    )(x, w1t, b1r, w2t, b2r)


def _se_split(x, w1, b1c, w2, b2c, thw, vmem_limit):
    n, c, hw = x.shape
    cr = w1.shape[0]
    n_hw = pl.cdiv(hw, thw)

    pool_kernel = functools.partial(_se_pool_kernel, hw=hw, thw=thw, inv_hw=1.0 / hw)
    s = pl.pallas_call(
        pool_kernel,
        out_shape=jax.ShapeDtypeStruct((n, c, 1), jnp.float32),
        grid_spec=pltpu.PrefetchScalarGridSpec(
            num_scalar_prefetch=0,
            grid=(n, n_hw),
            in_specs=[
                pl.BlockSpec((None, c, thw), lambda i, j: (i, 0, j)),  # x slab
                pl.BlockSpec((cr, c), lambda i, j: (0, 0)),            # fc1 weight
                pl.BlockSpec((cr, 1), lambda i, j: (0, 0)),            # fc1 bias col
                pl.BlockSpec((c, cr), lambda i, j: (0, 0)),            # fc2 weight
                pl.BlockSpec((c, 1), lambda i, j: (0, 0)),             # fc2 bias col
            ],
            out_specs=pl.BlockSpec((None, c, 1), lambda i, j: (i, 0, 0)),
            scratch_shapes=[pltpu.VMEM((c, 1), jnp.float32)],
        ),
        compiler_params=pltpu.CompilerParams(
            dimension_semantics=("parallel", "arbitrary"),
            vmem_limit_bytes=vmem_limit,
        ),
    )(x, w1, b1c, w2, b2c)

    return pl.pallas_call(
        _se_scale_kernel,
        out_shape=jax.ShapeDtypeStruct((n, c, hw), x.dtype),
        grid_spec=pltpu.PrefetchScalarGridSpec(
            num_scalar_prefetch=0,
            grid=(n, n_hw),
            in_specs=[
                pl.BlockSpec((None, c, thw), lambda i, j: (i, 0, j)),
                pl.BlockSpec((None, c, 1), lambda i, j: (i, 0, 0)),
            ],
            out_specs=pl.BlockSpec((None, c, thw), lambda i, j: (i, 0, j)),
        ),
        compiler_params=pltpu.CompilerParams(
            dimension_semantics=("parallel", "arbitrary"),
            vmem_limit_bytes=vmem_limit,
        ),
    )(x, s)


def se_module(x_nchw, w1, b1, w2, b2, *, max_tile_bytes=None):
    """SEModule forward.  x_nchw: (N, C, H, W).  w1: (Cr, C), b1: (Cr,),
    w2: (C, Cr), b2: (C,).  Returns (N, C, H, W) in x's dtype."""
    N, C, H, W = x_nchw.shape
    Cr = w1.shape[0]
    HW = H * W

    x = x_nchw.reshape(N, C, HW)   # trivial row-major reshape: no HBM copy

    vmem_cap = _vmem_capacity_bytes()
    vmem_limit = int(vmem_cap * 0.75)
    mode, tb, thw = _plan(N, C, HW, x.dtype.itemsize, vmem_cap, max_tile_bytes)

    if mode == "fused":
        out = _se_fused(x, w1.T, b1.reshape(1, Cr), w2.T, b2.reshape(1, C),
                        tb, vmem_limit)
    else:
        out = _se_split(x, w1, b1.reshape(Cr, 1), w2, b2.reshape(C, 1),
                        thw, vmem_limit)

    return out.reshape(N, C, H, W)


def se_module_ref(x, w1, b1, w2, b2):
    """Pure-JAX reference matching PyTorch SEModule.forward semantics."""
    pooled = jnp.mean(x, axis=(2, 3))                      # (N, C)
    h = jnp.maximum(pooled @ w1.T + b1, 0.0)               # (N, Cr)
    s = jax.nn.sigmoid(h @ w2.T + b2)                      # (N, C)
    return x * s[:, :, None, None]


# --------------------------------------------------------------------------- #
# Self-test
# --------------------------------------------------------------------------- #
if __name__ == "__main__":
    def _check(n, c, r, h, w, key, **kw):
        cr = c // r
        kx, k1, k2, k3, k4 = jax.random.split(key, 5)
        x = jax.random.normal(kx, (n, c, h, w), dtype=jnp.float32)
        w1 = jax.random.normal(k1, (cr, c), dtype=jnp.float32) * 0.1
        b1 = jax.random.normal(k2, (cr,), dtype=jnp.float32) * 0.1
        w2 = jax.random.normal(k3, (c, cr), dtype=jnp.float32) * 0.1
        b2 = jax.random.normal(k4, (c,), dtype=jnp.float32) * 0.1
        out = jax.block_until_ready(se_module(x, w1, b1, w2, b2, **kw))
        ref = se_module_ref(x, w1, b1, w2, b2)
        assert out.shape == ref.shape
        assert jnp.allclose(out, ref, atol=1e-5, rtol=1e-5), "mismatch vs reference"

    key = jax.random.PRNGKey(0)
    ka, kb, kc = jax.random.split(key, 3)
    # Fused path, lane-aligned H*W.
    _check(2, 8, 4, 16, 16, ka)
    # Fused path, non-128-multiple H*W and a (possibly) ragged batch tail.
    _check(3, 8, 4, 15, 15, kb)
    # Forced large-feature-map fallback (H*W split across the grid).
    _check(3, 8, 4, 15, 15, kc, max_tile_bytes=4096)

    print("KERNEL_OK")
</pallas_src>

<mosaic_0001>
module attributes {stable_mosaic.version = 11 : i64} {
  func.func @_se_fused_kernel(%arg0: i32, %arg1: memref<1x8x256xf32, #tpu.memory_space<vmem>>, %arg2: memref<8x2xf32, #tpu.memory_space<vmem>>, %arg3: memref<1x2xf32, #tpu.memory_space<vmem>>, %arg4: memref<2x8xf32, #tpu.memory_space<vmem>>, %arg5: memref<1x8xf32, #tpu.memory_space<vmem>>, %arg6: memref<1x8x256xf32, #tpu.memory_space<vmem>>) attributes {dimension_semantics = [#tpu.dimension_semantics<parallel>], iteration_bounds = array<i64: 2>, scalar_prefetch = 0 : i64, scratch_operands = 0 : i64, tpu.core_type = #tpu.core_type<tc>, window_params = [{transform_indices = @transform_0, window_bounds = array<i64: 1, 8, 256>}, {pipeline_mode = #tpu.pipeline_mode<synchronous>, transform_indices = @transform_1, window_bounds = array<i64: 8, 2>}, {pipeline_mode = #tpu.pipeline_mode<synchronous>, transform_indices = @transform_2, window_bounds = array<i64: 1, 2>}, {pipeline_mode = #tpu.pipeline_mode<synchronous>, transform_indices = @transform_3, window_bounds = array<i64: 2, 8>}, {pipeline_mode = #tpu.pipeline_mode<synchronous>, transform_indices = @transform_4, window_bounds = array<i64: 1, 8>}, {transform_indices = @transform_5, window_bounds = array<i64: 1, 8, 256>}]} {
    %c0 = arith.constant 0 : index
    %c0_0 = arith.constant 0 : index
    %c0_1 = arith.constant 0 : index
    %0 = vector.load %arg1[%c0, %c0_0, %c0_1] : memref<1x8x256xf32, #tpu.memory_space<vmem>>, vector<1x8x256xf32>
    %cst = arith.constant dense<0.000000e+00> : vector<1x8xf32>
    %1 = vector.multi_reduction <add>, %0, %cst [2] : vector<1x8x256xf32> to vector<1x8xf32>
    %cst_2 = arith.constant 3.906250e-03 : f32
    %2 = vector.broadcast %cst_2 : f32 to vector<1x8xf32>
    %3 = arith.mulf %1, %2 : vector<1x8xf32>
    %c0_3 = arith.constant 0 : index
    %c0_4 = arith.constant 0 : index
    %4 = vector.load %arg2[%c0_3, %c0_4] : memref<8x2xf32, #tpu.memory_space<vmem>>, vector<8x2xf32>
    %cst_5 = arith.constant dense<0.000000e+00> : vector<1x2xf32>
    %5 = tpu.matmul %3, %4, %cst_5 {dimension_numbers = #tpu.dot_dimension_numbers<[1], [0], [0], [1], [0, 0, 1, 1], [], []>} : vector<1x8xf32>, vector<8x2xf32>, vector<1x2xf32> -> vector<1x2xf32>
    %c0_6 = arith.constant 0 : index
    %c0_7 = arith.constant 0 : index
    %6 = vector.load %arg3[%c0_6, %c0_7] : memref<1x2xf32, #tpu.memory_space<vmem>>, vector<1x2xf32>
    %7 = arith.addf %5, %6 : vector<1x2xf32>
    %cst_8 = arith.constant 0.000000e+00 : f32
    %8 = vector.broadcast %cst_8 : f32 to vector<1x2xf32>
    %9 = arith.maximumf %7, %8 : vector<1x2xf32>
    %c0_9 = arith.constant 0 : index
    %c0_10 = arith.constant 0 : index
    %10 = vector.load %arg4[%c0_9, %c0_10] : memref<2x8xf32, #tpu.memory_space<vmem>>, vector<2x8xf32>
    %cst_11 = arith.constant dense<0.000000e+00> : vector<1x8xf32>
    %11 = tpu.matmul %9, %10, %cst_11 {dimension_numbers = #tpu.dot_dimension_numbers<[1], [0], [0], [1], [0, 0, 1, 1], [], []>} : vector<1x2xf32>, vector<2x8xf32>, vector<1x8xf32> -> vector<1x8xf32>
    %c0_12 = arith.constant 0 : index
    %c0_13 = arith.constant 0 : index
    %12 = vector.load %arg5[%c0_12, %c0_13] : memref<1x8xf32, #tpu.memory_space<vmem>>, vector<1x8xf32>
    %13 = arith.addf %11, %12 : vector<1x8xf32>
    %14 = arith.negf %13 : vector<1x8xf32>
    %15 = math.exp %14 : vector<1x8xf32>
    %cst_14 = arith.constant 1.000000e+00 : f32
    %16 = vector.broadcast %cst_14 : f32 to vector<1x8xf32>
    %17 = arith.addf %16, %15 : vector<1x8xf32>
    %18 = arith.divf %16, %17 : vector<1x8xf32>
    %19 = vector.shape_cast %18 : vector<1x8xf32> to vector<1x8x1xf32>
    %20 = vector.broadcast %19 : vector<1x8x1xf32> to vector<1x8x256xf32>
    %21 = arith.mulf %0, %20 : vector<1x8x256xf32>
    %c0_15 = arith.constant 0 : index
    %c0_16 = arith.constant 0 : index
    %c0_17 = arith.constant 0 : index
    %22 = vector.load %arg6[%c0_15, %c0_16, %c0_17] : memref<1x8x256xf32, #tpu.memory_space<vmem>>, vector<1x8x256xf32>
    tpu.vector_store %arg6[%c0_15, %c0_16, %c0_17], %21 {strides = array<i32>} : memref<1x8x256xf32, #tpu.memory_space<vmem>>, vector<1x8x256xf32>,
    return
  }
  func.func @transform_0(%arg0: i32) -> (i32, i32, i32) {
    %c0_i32 = arith.constant 0 : i32
    %c0_i32_0 = arith.constant 0 : i32
    %c0_i32_1 = arith.constant 0 : i32
    return %arg0, %c0_i32, %c0_i32_0 : i32, i32, i32
  }
  func.func @transform_1(%arg0: i32) -> (i32, i32) {
    %c0_i32 = arith.constant 0 : i32
    %c0_i32_0 = arith.constant 0 : i32
    %c0_i32_1 = arith.constant 0 : i32
    return %c0_i32, %c0_i32_0 : i32, i32
  }
  func.func @transform_2(%arg0: i32) -> (i32, i32) {
    %c0_i32 = arith.constant 0 : i32
    %c0_i32_0 = arith.constant 0 : i32
    %c0_i32_1 = arith.constant 0 : i32
    return %c0_i32, %c0_i32_0 : i32, i32
  }
  func.func @transform_3(%arg0: i32) -> (i32, i32) {
    %c0_i32 = arith.constant 0 : i32
    %c0_i32_0 = arith.constant 0 : i32
    %c0_i32_1 = arith.constant 0 : i32
    return %c0_i32, %c0_i32_0 : i32, i32
  }
  func.func @transform_4(%arg0: i32) -> (i32, i32) {
    %c0_i32 = arith.constant 0 : i32
    %c0_i32_0 = arith.constant 0 : i32
    %c0_i32_1 = arith.constant 0 : i32
    return %c0_i32, %c0_i32_0 : i32, i32
  }
  func.func @transform_5(%arg0: i32) -> (i32, i32, i32) {
    %c0_i32 = arith.constant 0 : i32
    %c0_i32_0 = arith.constant 0 : i32
    %c0_i32_1 = arith.constant 0 : i32
    return %arg0, %c0_i32, %c0_i32_0 : i32, i32, i32
  }
}

</mosaic_0001>

<bundles_post_ra>
// kernel: tpu_custom_call.1
= control target key start
LH: loop header
LB: loop body
LE: loop exit
PB: predicated region body
PF: predicated region fallthrough
CT: control target
= control target key end

     0   :  { %10 = vsyncpa [#allocation3], 0  ;;  %s889_s0 = inlined_call_operand.hbm [shape: f32[2,8,256], index: 0, kind: input, shape index: {}]   ;;  %s890_s1 = inlined_call_operand.vmem [shape: f32[8,2], index: 1, kind: input, shape index: {}]   ;;  %s891_s2 = inlined_call_operand.vmem [shape: f32[1,2], index: 2, kind: input, shape index: {}]   ;;  %s892_s3 = inlined_call_operand.vmem [shape: f32[2,8], index: 3, kind: input, shape index: {}]   ;;  %s893_s4 = inlined_call_operand.vmem [shape: f32[1,8], index: 4, kind: input, shape index: {}]   ;;  %s894_s5 = inlined_call_operand.hbm [shape: f32[2,8,256], index: 5, kind: output, shape index: {}]  }
   0x1   :  { %12 = vsyncpa [#allocation3 + $0x1], 0 }
   0x2   :  { %13 = vsyncpa [#allocation4], 0 }
   0x3   :  { %15 = vsyncpa [#allocation4 + $0x1], 0  ;;  %s726_s18 = smov 0   ;;  %s728_s19 = smov 0  }
   0x4   :  { %s730_s20 = smov 0   ;;  %s732_s21 = smov 0  }
   0x5 LB: > { %s747_s22 = sadd.s32 4294967295, %s690_s21   ;;  %s512_s23 = sadd.s32 4294967294, %s690_s21   ;;  %s690_s21 = sphi %s732_s21, %s911_s21   ;;  %s686_s20 = sphi %s730_s20, %s910_s20   ;;  %s682_s19 = sphi %s728_s19, %s909_s19   ;;  %s678_s18 = sphi %s726_s18, %s908_s18  }
   0x6   : > { %s751_s24 = sadd.s32 1, %s690_s21   ;;  %s28_s25 = sadd.s32 1, %s686_s20 }
   0x7   : > { %s25_s26 = ssub.s32 %s690_s21, %s751_s24  ;;  %p35_p0 = scmp.ne.s32.totalorder %s686_s20, %s682_s19 }
   0x8   : > { %p26_p1 = scmp.eq.s32.totalorder %s25_s26, 0  ;;  %p36_p2 = scmp.eq.s32.totalorder %s690_s21, 0 }
   0x9   : > { %p41_p3 = scmp.ne.s32.totalorder %s682_s19, %s678_s18  ;;  %p42_p4 = scmp.eq.s32.totalorder %s747_s22, 0 }
   0xa   : > { %s763_s27 = scalar_select %p26_p1, %s686_s20, %s28_s25  }
   0xb   : > { %p765_p5 = por %p36_p2, %p35_p0  ;;  %p769_p6 = por %p42_p4, %p41_p3 }
   0xc   : > { %p149_p7 = scmp.eq.s32.totalorder %s747_s22, 1  ;;  %p155_p8 = scmp.eq.s32.totalorder %s512_s23, 1 }
   0xd   : > { %s898_s29 = scalar_select %p769_p6, 1, 0 }
   0xe   : > { %p558_p10 = scmp.lt.s32.totalorder %s690_s21, 2  ;;  %p776_p11 = por %p149_p7, %p35_p0 }
   0xf   : > { %p780_p12 = por %p155_p8, %p41_p3  ;;  %s187_s7 = sand.u32 1, %s686_s20  }
  0x10   : > { %s899_s30 = scalar_select %p776_p11, 1, 0 }
  0x11   : > { %s900_s6 = scalar_select %p780_p12, 1, 0 }
  0x12   : > { %s530_s8 = sshll.u32 %s690_s21, 8  ;;  %s515_s9 = sshll.u32 %s187_s7, 4 }
  0x13   : > { %s789_s12 = scalar_lea.hbm %s889_s0, %s530_s8  ;;  %s191_s13 = scalar_lea.vmem [#allocation2], %s515_s9 }
  0x14   : > { %s199_s14 = sshll.u32 %s191_s13, 4  ;;  %p793_p13 = pnand %p558_p10, %p765_p5  ;;  %s797_s14 = int_to_ptr.vmem [resolvable:$true] %s199_s14 }
  0x15   : > { %s188_s16 = scalar_lea.sflag [#allocation3], %s187_s7  ;;  %s598_s17 = scalar_lea.hbm %s789_s12, 256 }
  0x16   : > { %p599_p2 = scmp.ne.s32.totalorder %s789_s12, %s598_s17  ;;  %p600_p3 = pneg %p793_p13 }
  0x17   : > { %s603_s26 = scalar_lea.hbm %s889_s0, 512  ;;  %p604_p5 = scmp.lt.s32.totalorder %s789_s12, %s889_s0 }
  0x18   : > { %p601_p4 = pnand %p600_p3, %p599_p2  ;;  %p605_p8 = scmp.lt.s32.totalorder %s603_s26, %s598_s17 }
  0x1a   : > { %p602_p7 = pneg %p601_p4  ;;  %p606_p10 = por %p605_p8, %p604_p5 }
  0x1c   : > { %p607_p9 = pnand %p606_p10, %p602_p7 }
  0x1e   : > { %610 = shalt.err (!%p607_p9)
}
  0x1f   : > { %s611_s7 = scalar_lea.vmem %s797_s14, 256  ;;  %s692_s9 = smov [#allocation2]  }
  0x20   : > { %p612_p0 = scmp.ne.s32.totalorder %s797_s14, %s611_s7  ;;  %s616_s10 = sshll.u32 %s692_s9, 4  ;;  %s617_s10 = int_to_ptr.vmem [resolvable:$false] %s616_s10 }
  0x21   : > { %s618_s11 = scalar_lea.vmem %s617_s10, 512  ;;  %p619_p4 = scmp.lt.s32.totalorder %s797_s14, %s617_s10 }
  0x22   : > { %p614_p1 = pnand %p612_p0, %p600_p3  ;;  %p620_p12 = scmp.lt.s32.totalorder %s618_s11, %s611_s7 }
  0x24   : > { %p615_p2 = pneg %p614_p1  ;;  %p621_p11 = por %p620_p12, %p619_p4 }
  0x26   : > { %p622_p6 = pnand %p621_p11, %p615_p2 }
  0x28   : > { %625 = shalt.err (!%p622_p6)
}
  0x29   : > { %553 = dma.hbm_to_vmem [thread:$0]  (!%p793_p13), %s789_s12, 256, %s797_s14, %s188_s16  }
  0x2a   : > { %p902_p9 = scmp.lt.s32.totalorder %s690_s21, 3  ;;  %p903_p7 = scmp.ge.s32.totalorder %s690_s21, 1 }
  0x2c   : > { %p205_p0 = pnand %p903_p7, %p902_p9 }
  0x2d   : > { %s824_s13 = sand.u32 (!%p205_p0), 1, %s682_s19   ;;  %p904_p6 = scmp.ne.s32.totalorder (!%p205_p0), %s898_s29, 0 }
  0x2e   : > { %208 = sbr.rel (%p205_p0) target bundleno = 753 (0x2f1), region = 40  ;;  %s519_s17 = sshll.u32 (!%p205_p0), %s824_s13, 4 }
  0x2f   : > { %s211_s23 = scalar_lea.sflag (!%p205_p0), [#allocation3], %s824_s13  ;;  %s214_s15 = scalar_lea.vmem (!%p205_p0), [#allocation2], %s519_s17 }
  0x33   : > { %669 = dma.done.wait (%p904_p6), %s211_s23, 256  }
  0x34   : > { %671 = vsyncadd (%p904_p6), %s211_s23, 4294967040  ;;  %v241_v0 = vld [vmem:[%s214_s15] sm:$0xff]  ;;  %v242_v1 = vld [vmem:[%s214_s15 + $0x8] sm:$0xff]  ;;  %v693_v3 = vmov 0.0   ;;  %vm694_vm0 = vmmov 0   ;;  %v250_v5 = vlaneseq  ;;  %vm256_vm1 = vcmask 64512  }
  0x35   : > { %v243_v2 = vadd.f32 %v242_v1, %v241_v0  ;;  %536 = vmatprep.subr.mxu0 %v693_v3  ;;  %v247_v4 = vld [vmem:[%s890_s1] sm:$0xff]  ;;  %541 = vmatprep.subr.mxu1 %v693_v3  ;;  %vm336_vm2 = vcmask 1041408   ;;  %vm332_vm3 = vcmask 15360   ;;  %s531_s7 = sshll.u32 %s747_s22, 8  ;;  %s240_s9 = scalar_lea.vmem [#allocation5], %s519_s17 }
  0x36   : > { %537 = vmatpush3.msra.mxu0 %v247_v4  ;;  %538 = vmatprep.mubr.msk.f32.mxu0 %vm694_vm0, %v693_v3  ;;  %v251_v6 = vand.u32 127, %v250_v5  ;;  %v253_v7 = vshrl.u32 %v250_v5, 7  ;;  %v330_v12 = vld [vmem:[%s892_s3] sm:$0x3]  ;;  %s442_s10 = sshll.u32 %s240_s9, 4  ;;  %s852_s15 = scalar_lea.hbm %s894_s5, %s531_s7  ;;  %s443_s10 = int_to_ptr.vmem [resolvable:$true] %s442_s10 }
  0x37   : > { %244 = vadd.xlane.f32.xlu0 %v243_v2  ;;  %543 = vmatprep.mubr.msk.f32.mxu1 %vm694_vm0, %v693_v3  ;;  %v248_v13 = vld [vmem:[%s891_s2] sm:$0x1]  ;;  %s428_s12 = scalar_lea.sflag [#allocation4], %s824_s13  ;;  %s626_s14 = scalar_lea.vmem %s443_s10, 256 }
  0x38   : > { %v254_v8 = vsub.s32 %v251_v6, %v253_v7  ;;  %542 = vmatpush3.msk.msra.mxu1 %vm336_vm2, %v330_v12  ;;  %v331_v18 = vld [vmem:[%s893_s4] sm:$0x1]  ;;  %v418_v25 = vsub.s32 0, %v253_v7  ;;  %p627_p11 = scmp.ne.s32.totalorder %s443_s10, %s626_s14  ;;  %p905_p12 = scmp.ne.s32.totalorder %s899_s30, 0 }
  0x39   : > { %s695_s22 = smov [#allocation5]  }
  0x3a   : > { %p628_p13 = pnand %p627_p11, %p905_p12  ;;  %s630_s17 = sshll.u32 %s695_s22, 4  ;;  %s631_s17 = int_to_ptr.vmem [resolvable:$false] %s630_s17 }
  0x3b   : > { %s632_s29 = scalar_lea.vmem %s631_s17, 512  ;;  %p633_p3 = scmp.lt.s32.totalorder %s443_s10, %s631_s17 }
  0x3c   : > { %p629_p1 = pneg %p628_p13  ;;  %p634_p5 = scmp.lt.s32.totalorder %s632_s29, %s626_s14 }
  0x3e   : > { %p635_p8 = por %p634_p5, %p633_p3 }
  0x40   : > { %p636_p10 = pnand %p635_p8, %p629_p1 }
  0xc0   : > { %v245_v9 = vpop.xlane.xlu0 %244 }
  0xc1   : > { %v246_v10 = vmul.f32 0.00390625, %v245_v9 }
  0xc3   : > { %v255_v11 = vrot.slane %v246_v10, %v254_v8 }
  0xc5   : > { %539 = vmatmul.mubr.msk.f32.vlgmr.msra.gmra.mxu0 %vm256_vm1, %v255_v11 }
 0x185   : > { %v325_v14 = vpop.f32.mrf.mxu0 }
 0x186   : > { %v326_v15 = vadd.f32 %v325_v14, %v248_v13 }
 0x187   : > { %v540_v16 = vpop.f32.mrf.mxu0 }
 0x188   : > { %v329_v17 = vmax.f32 %v326_v15, 0.0 }
 0x18a   : > { %544 = vmatmul.mubr.msk.f32.vlgmr.msra.gmra.mxu1 %vm332_vm3, %v329_v17 }
 0x24a   : > { %v406_v19 = vpop.f32.mrf.mxu1 }
 0x24b   : > { %v407_v20 = vadd.f32 %v406_v19, %v331_v18 }
 0x24c   : > { %v545_v21 = vpop.f32.mrf.mxu1 }
 0x24d   : > { %v524_v22 = vmul.f32 -1.442695, %v407_v20 }
 0x24f   : > { %594 = vpow2.f32 %v524_v22 }
 0x25c   : > { %v595_v23 = vpop.eup %594 }
 0x25d   : > { %v413_v24 = vadd.f32 1.0, %v595_v23 }
 0x25f   : > { %596 = vrcp.f32 %v413_v24 }
 0x26c   : > { %v597_v26 = vpop.eup %596 }
 0x26d   : > { %v419_v27 = vrot.slane %v597_v26, %v418_v25 }
 0x26f   : > { %421 = vbcast.lane.b32.xlu0 %v419_v27, 256 }
 0x2e1   : > { %v422_v28 = vpop.permute.xlu0 %421 }
 0x2e2   : > { %v423_v29 = vmul.f32 %v422_v28, %v241_v0  ;;  %v424_v30 = vmul.f32 %v422_v28, %v242_v1 }
 0x2e4   : > { %425 = vst [vmem:[%s240_s9] sm:$0xff] %v423_v29  ;;  %426 = vst [vmem:[%s240_s9 + $0x8] sm:$0xff] %v424_v30 }
 0x2e5   : > { %639 = shalt.err (!%p636_p10)
}
 0x2e6   : > { %s640_s16 = scalar_lea.hbm %s852_s15, 256  ;;  %s644_s26 = scalar_lea.hbm %s894_s5, 512 }
 0x2e7   : > { %p641_p2 = scmp.ne.s32.totalorder %s852_s15, %s640_s16  ;;  %p645_p7 = scmp.lt.s32.totalorder %s852_s15, %s894_s5 }
 0x2e8   : > { %p646_p0 = scmp.lt.s32.totalorder %s644_s26, %s640_s16 }
 0x2e9   : > { %p642_p4 = pnand %p641_p2, %p905_p12 }
 0x2ea   : > { %p647_p6 = por %p646_p0, %p645_p7 }
 0x2eb   : > { %p643_p9 = pneg %p642_p4 }
 0x2ed   : > { %p648_p11 = pnand %p647_p6, %p643_p9 }
 0x2ef   : > { %651 = shalt.err (!%p648_p11)
}
 0x2f0   : > { %548 = dma.vmem_to_hbm [thread:$0]  (%p905_p12), %s443_s10, 256, %s852_s15, %s428_s12  }
 0x2f1 PF: > { %s454_s7 = sand.u32 1, %s678_s18   ;;  %p906_p13 = scmp.ne.s32.totalorder %s900_s6, 0 }
 0x2f2   : > { %p907_p1 = scmp.ge.s32.totalorder %s690_s21, 2  ;;  %s455_s9 = scalar_lea.sflag [#allocation4], %s454_s7 }
 0x2f4   : > { %p555_p3 = pnand %p907_p1, %p906_p13 }
 0x2f6   : > { %p556_p5 = pneg %p555_p3 }
 0x2f8   : > { %673 = dma.done.wait (%p556_p5), %s455_s9, 256  }
 0x2f9   : > { %675 = vsyncadd (%p556_p5), %s455_s9, 4294967040  ;;  %p18_p8 = scmp.ge.s32.totalorder %s751_s24, 4   ;;  %s908_s18 = smov %s682_s19 }
 0x2fa   : > { %s909_s19 = smov %s686_s20  ;;  %s910_s20 = smov %s763_s27 }
 0x2fb   : > { %s911_s21 = smov %s751_s24  ;;  %20 = sbr.rel (!%p18_p8) target bundleno = 5 (0x5), region = 85 }
 0x300   :  { %460 = vsyncpa [#allocation3], 1 }
 0x301   :  { %462 = vsyncpa [#allocation3 + $0x1], 1 }
 0x302   :  { %463 = vsyncpa [#allocation4], 1 }
 0x303   :  { %465 = vsyncpa [#allocation4 + $0x1], 1 }

</bundles_post_ra>
